<compile_context>
chip_gen: v6e
topology: v6e:2x2x1
jax: 0.10.0
libtpu: 0.0.40
codegen_flags: <defaults>
</compile_context>

<pallas_src>
import functools
import math

import jax
import jax.numpy as jnp
from jax.experimental import pallas as pl
from jax.experimental.pallas import tpu as pltpu


def _round_up(v, m):
    return (v + m - 1) // m * m


# --------------------------------------------------------------------------
# One GraphConv layer: tiled aggregation + split root/neighbor linear maps.
# --------------------------------------------------------------------------
def _graph_conv_kernel(a_ref, xs_ref, xd_ref, wr_ref, wn_ref, b_ref, o_ref,
                       acc_ref, *, apply_relu):
    k = pl.program_id(1)

    @pl.when(k == 0)
    def _init():
        acc_ref[...] = jnp.zeros_like(acc_ref)

    # Neighbor aggregation: A streamed as int8 (halved HBM bytes), widened to
    # bf16 in-register; xs is already bf16. bf16 MXU matmul, f32 accumulation.
    acc_ref[...] += jnp.dot(a_ref[...].astype(jnp.bfloat16), xs_ref[...],
                            preferred_element_type=jnp.float32)

    @pl.when(k == pl.num_programs(1) - 1)
    def _finalize():
        # Two dots instead of concat + fused matmul: no (tm, 2*F) VMEM copy,
        # root term exact in f32, neighbor term on the bf16 MXU path.
        y = jnp.dot(xd_ref[...], wr_ref[...],
                    preferred_element_type=jnp.float32)
        y = y + jnp.dot(acc_ref[...].astype(jnp.bfloat16), wn_ref[...],
                        preferred_element_type=jnp.float32)
        y = y + b_ref[...]
        if apply_relu:
            y = jnp.maximum(y, 0.0)
        o_ref[...] = y.astype(o_ref.dtype)


def _graph_conv_layer(adj_i8, xs_bf16, xd_f32, w_root, w_rel, bias, *,
                      apply_relu, tm, tk):
    """adj_i8: (Np, Np) int8; xs_bf16: (Np, Fp) bf16; xd_f32: (Np, Fp) f32;
    w_root: (Fp, Op) f32; w_rel: (Fp, Op) bf16; bias: (1, Op) f32."""
    np_, fp = xd_f32.shape
    op = w_root.shape[1]
    grid = (np_ // tm, np_ // tk)

    kernel = functools.partial(_graph_conv_kernel, apply_relu=apply_relu)

    flops = 2 * np_ * np_ * fp + 2 * (2 * np_ * fp * op)
    bytes_accessed = (np_ * np_                        # int8 adjacency stream
                      + (np_ // tm) * np_ * fp * 2     # re-streamed bf16 xs
                      + np_ * fp * 4                   # f32 xd (root term)
                      + np_ * op * 4                   # f32 output
                      + fp * op * 6 + op * 4)          # resident weights/bias

    return pl.pallas_call(
        kernel,
        out_shape=jax.ShapeDtypeStruct((np_, op), jnp.float32),
        grid_spec=pltpu.PrefetchScalarGridSpec(
            num_scalar_prefetch=0,
            grid=grid,
            in_specs=[
                pl.BlockSpec((tm, tk), lambda i, k: (i, k)),    # A[dst, src] (int8)
                pl.BlockSpec((tk, fp), lambda i, k: (k, 0)),    # src features (bf16)
                pl.BlockSpec((tm, fp), lambda i, k: (i, 0)),    # dst features (f32)
                pl.BlockSpec((fp, op), lambda i, k: (0, 0)),    # W_root (f32)
                pl.BlockSpec((fp, op), lambda i, k: (0, 0)),    # W_rel (bf16)
                pl.BlockSpec((1, op), lambda i, k: (0, 0)),     # bias (f32)
            ],
            out_specs=pl.BlockSpec((tm, op), lambda i, k: (i, 0)),
            scratch_shapes=[pltpu.VMEM((tm, fp), jnp.float32)],  # f32 agg accumulator
        ),
        compiler_params=pltpu.CompilerParams(
            dimension_semantics=("parallel", "arbitrary"),
            vmem_limit_bytes=32 * 1024 * 1024,
        ),
        cost_estimate=pl.CostEstimate(flops=flops, transcendentals=0,
                                      bytes_accessed=bytes_accessed),
    )(adj_i8, xs_bf16, xd_f32, w_root, w_rel, bias)


# --------------------------------------------------------------------------
# Wrapper: padding, weight padding, adjacency densification, two layers.
# --------------------------------------------------------------------------
def _pick_tiles(np0):
    """Pick (tm, tk, Np) given the node count already rounded to 128."""
    if np0 >= 2048:
        tm, tk = 1024, 512           # big dst tile: halves the xs re-stream
    elif np0 >= 1024:
        tm, tk = 512, 512
    elif np0 >= 256 and (np0 // 2) % 128 == 0:
        tm, tk = np0 // 2, np0 // 2  # >= 2 dst tiles for v7x's 2 TensorCores
    else:
        tm, tk = np0, np0
    np_ = _round_up(np0, max(tm, tk))
    return tm, tk, np_


def _pad_w(w, fp, op, dtype):
    f, o = w.shape
    return jnp.zeros((fp, op), dtype).at[:f, :o].set(w.astype(dtype))


def _pad_bias(b, op):
    b = b.reshape(-1)
    return jnp.zeros((1, op), jnp.float32).at[0, :b.shape[0]].set(b.astype(jnp.float32))


def gcn_encoder(x, edge_index, params, *, tile_m=None, tile_k=None):
    """x: (N, Fin) float32, edge_index: (2, E) int32, params: dict of weights."""
    n, f_in = x.shape
    hidden = params["w1_root"].shape[1]          # 2 * out_channels
    out_channels = params["w2_root"].shape[1]

    # Lane-dense feature widths (multiples of 128), zero-padded columns.
    fp = _round_up(f_in, 128)
    hp = _round_up(hidden, 128)
    op = _round_up(out_channels, 128)

    np0 = _round_up(n, 128)
    if tile_m is None or tile_k is None:
        tm, tk, np_ = _pick_tiles(np0)
    else:
        tm, tk = tile_m, tile_k
        np_ = _round_up(np0, math.lcm(tm, tk))

    # Padded features: f32 copy for the exact root term, bf16 copy for the
    # re-streamed aggregation operand. Padded rows/cols are inert (zero A
    # cols, zero weight rows, zero bias cols), and we slice [:n] at the end.
    x_pad = jnp.zeros((np_, fp), jnp.float32).at[:n, :f_in].set(x.astype(jnp.float32))
    x_bf16 = x_pad.astype(jnp.bfloat16)

    # Dense adjacency A[dst, src] = edge multiplicity, built directly in int8
    # (no f32 N^2 intermediate). Exact for multiplicities <= 127.
    src, dst = edge_index[0], edge_index[1]
    adj_i8 = jnp.zeros((np_, np_), jnp.int8).at[dst, src].add(jnp.int8(1))

    w1_root = _pad_w(params["w1_root"], fp, hp, jnp.float32)
    w1_rel = _pad_w(params["w1_rel"], fp, hp, jnp.bfloat16)
    b1 = _pad_bias(params["b1"], hp)
    w2_root = _pad_w(params["w2_root"], hp, op, jnp.float32)
    w2_rel = _pad_w(params["w2_rel"], hp, op, jnp.bfloat16)
    b2 = _pad_bias(params["b2"], op)

    # Layer 1 (+ ReLU). h1 round-trips through HBM; layer 2 re-streams it as
    # bf16 (halved xs traffic) and keeps the f32 copy only for the root term.
    h1 = _graph_conv_layer(adj_i8, x_bf16, x_pad, w1_root, w1_rel, b1,
                           apply_relu=True, tm=tm, tk=tk)
    h1_bf16 = h1.astype(jnp.bfloat16)
    out = _graph_conv_layer(adj_i8, h1_bf16, h1, w2_root, w2_rel, b2,
                            apply_relu=False, tm=tm, tk=tk)

    return out[:n, :out_channels]


# --------------------------------------------------------------------------
# Parameters + references.
# --------------------------------------------------------------------------
def init_params(key, in_channels, out_channels):
    """Synthetic GraphConv parameters, weights stored (in, out) so y = x @ W."""
    hid = 2 * out_channels
    ks = jax.random.split(key, 6)

    def glorot(k, fan_in, fan_out):
        lim = (6.0 / (fan_in + fan_out)) ** 0.5
        return jax.random.uniform(k, (fan_in, fan_out), jnp.float32, -lim, lim)

    return {
        "w1_root": glorot(ks[0], in_channels, hid),
        "w1_rel":  glorot(ks[1], in_channels, hid),
        "b1":      0.01 * jax.random.normal(ks[2], (1, hid), jnp.float32),
        "w2_root": glorot(ks[3], hid, out_channels),
        "w2_rel":  glorot(ks[4], hid, out_channels),
        "b2":      0.01 * jax.random.normal(ks[5], (1, out_channels), jnp.float32),
    }


def gcn_encoder_ref_f32(x, edge_index, params):
    """Pure-f32 reference matching PyTorch GCNEncoder/GraphConv semantics."""
    n = x.shape[0]
    adj = jnp.zeros((n, n), jnp.float32).at[edge_index[1], edge_index[0]].add(1.0)
    h = jnp.maximum(x @ params["w1_root"] + (adj @ x) @ params["w1_rel"] + params["b1"], 0.0)
    return h @ params["w2_root"] + (adj @ h) @ params["w2_rel"] + params["b2"]


def gcn_encoder_ref_mixed(x, edge_index, params):
    """Reference mirroring the kernel precision policy: bf16 A/xs aggregation
    with f32 accumulation, bf16 neighbor linear map, f32 root/bias/ReLU."""
    n = x.shape[0]
    adj = jnp.zeros((n, n), jnp.float32).at[edge_index[1], edge_index[0]].add(1.0)
    a16 = adj.astype(jnp.bfloat16)

    def layer(h_f32, w_root, w_rel, b, relu):
        agg = jnp.dot(a16, h_f32.astype(jnp.bfloat16),
                      preferred_element_type=jnp.float32)
        y = (h_f32 @ w_root
             + jnp.dot(agg.astype(jnp.bfloat16), w_rel.astype(jnp.bfloat16),
                       preferred_element_type=jnp.float32)
             + b)
        return jnp.maximum(y, 0.0) if relu else y

    h = layer(x, params["w1_root"], params["w1_rel"], params["b1"], True)
    return layer(h, params["w2_root"], params["w2_rel"], params["b2"], False)


def _rel_err(a, b):
    return float(jnp.linalg.norm(a - b) / (jnp.linalg.norm(b) + 1e-12))


if __name__ == "__main__":
    key = jax.random.PRNGKey(0)
    k_x, k_e, k_p, k_x2, k_e2 = jax.random.split(key, 5)

    IN_CH = 8         # in_channels
    OUT_CH = 4        # out_channels (hidden = 2 * out_channels = 8)
    params = init_params(k_p, IN_CH, OUT_CH)

    # ---- Test 1: tiny graph (single-tile grid) ------------------------------
    N, E = 16, 32
    x = jax.random.normal(k_x, (N, IN_CH), jnp.float32)
    edge_index = jax.random.randint(k_e, (2, E), 0, N, jnp.int32)

    out = gcn_encoder(x, edge_index, params)
    jax.block_until_ready(out)
    assert out.shape == (N, OUT_CH)
    assert _rel_err(out, gcn_encoder_ref_mixed(x, edge_index, params)) < 1e-2, \
        "mismatch vs mixed-precision reference (test 1)"
    assert _rel_err(out, gcn_encoder_ref_f32(x, edge_index, params)) < 3e-2, \
        "mismatch vs f32 reference (test 1)"

    # ---- Test 2: multi-tile grid — exercises the k-axis accumulator path ----
    N2, E2 = 200, 600
    x2 = jax.random.normal(k_x2, (N2, IN_CH), jnp.float32)
    edge_index2 = jax.random.randint(k_e2, (2, E2), 0, N2, jnp.int32)

    out2 = gcn_encoder(x2, edge_index2, params, tile_m=128, tile_k=128)
    jax.block_until_ready(out2)
    assert out2.shape == (N2, OUT_CH)
    assert _rel_err(out2, gcn_encoder_ref_mixed(x2, edge_index2, params)) < 1e-2, \
        "mismatch vs mixed-precision reference (test 2, tiled path)"
    assert _rel_err(out2, gcn_encoder_ref_f32(x2, edge_index2, params)) < 3e-2, \
        "mismatch vs f32 reference (test 2, tiled path)"

    print("KERNEL_OK")
</pallas_src>

<mosaic_0001>
module attributes {stable_mosaic.version = 11 : i64} {
  func.func @_graph_conv_kernel(%arg0: i32, %arg1: i32, %arg2: memref<128x128xi8, #tpu.memory_space<vmem>>, %arg3: memref<128x128xbf16, #tpu.memory_space<vmem>>, %arg4: memref<128x128xf32, #tpu.memory_space<vmem>>, %arg5: memref<128x128xf32, #tpu.memory_space<vmem>>, %arg6: memref<128x128xbf16, #tpu.memory_space<vmem>>, %arg7: memref<1x128xf32, #tpu.memory_space<vmem>>, %arg8: memref<128x128xf32, #tpu.memory_space<vmem>>, %arg9: memref<128x128xf32, #tpu.memory_space<vmem>>) attributes {dimension_semantics = [#tpu.dimension_semantics<parallel>, #tpu.dimension_semantics<arbitrary>], iteration_bounds = array<i64: 1, 1>, scalar_prefetch = 0 : i64, scratch_operands = 1 : i64, tpu.core_type = #tpu.core_type<tc>, window_params = [{transform_indices = @transform_0, window_bounds = array<i64: 128, 128>}, {transform_indices = @transform_1, window_bounds = array<i64: 128, 128>}, {transform_indices = @transform_2, window_bounds = array<i64: 128, 128>}, {pipeline_mode = #tpu.pipeline_mode<synchronous>, transform_indices = @transform_3, window_bounds = array<i64: 128, 128>}, {pipeline_mode = #tpu.pipeline_mode<synchronous>, transform_indices = @transform_4, window_bounds = array<i64: 128, 128>}, {pipeline_mode = #tpu.pipeline_mode<synchronous>, transform_indices = @transform_5, window_bounds = array<i64: 1, 128>}, {transform_indices = @transform_6, window_bounds = array<i64: 128, 128>}]} {
    %c0_i32 = arith.constant 0 : i32
    %0 = arith.cmpi eq, %arg1, %c0_i32 : i32
    %1 = arith.extui %0 : i1 to i32
    %c0_i32_0 = arith.constant 0 : i32
    %2 = arith.cmpi ne, %1, %c0_i32_0 : i32
    scf.if %2 {
      %cst_10 = arith.constant 0.000000e+00 : f32
      %13 = vector.broadcast %cst_10 : f32 to vector<128x128xf32>
      %c0_11 = arith.constant 0 : index
      %c0_12 = arith.constant 0 : index
      %14 = vector.load %arg9[%c0_11, %c0_12] : memref<128x128xf32, #tpu.memory_space<vmem>>, vector<128x128xf32>
      tpu.vector_store %arg9[%c0_11, %c0_12], %13 {strides = array<i32>} : memref<128x128xf32, #tpu.memory_space<vmem>>, vector<128x128xf32>,
    } else {
    }
    %c0 = arith.constant 0 : index
    %c0_1 = arith.constant 0 : index
    %3 = vector.load %arg9[%c0, %c0_1] : memref<128x128xf32, #tpu.memory_space<vmem>>, vector<128x128xf32>
    %c0_2 = arith.constant 0 : index
    %c0_3 = arith.constant 0 : index
    %4 = vector.load %arg2[%c0_2, %c0_3] : memref<128x128xi8, #tpu.memory_space<vmem>>, vector<128x128xi8>
    %5 = arith.sitofp %4 : vector<128x128xi8> to vector<128x128xbf16>
    %c0_4 = arith.constant 0 : index
    %c0_5 = arith.constant 0 : index
    %6 = vector.load %arg3[%c0_4, %c0_5] : memref<128x128xbf16, #tpu.memory_space<vmem>>, vector<128x128xbf16>
    %cst = arith.constant dense<0.000000e+00> : vector<128x128xf32>
    %7 = tpu.matmul %5, %6, %cst {dimension_numbers = #tpu.dot_dimension_numbers<[1], [0], [0], [1], [0, 0, 1, 1], [], []>} : vector<128x128xbf16>, vector<128x128xbf16>, vector<128x128xf32> -> vector<128x128xf32>
    %8 = arith.addf %3, %7 : vector<128x128xf32>
    %c0_6 = arith.constant 0 : index
    %c0_7 = arith.constant 0 : index
    %9 = vector.load %arg9[%c0_6, %c0_7] : memref<128x128xf32, #tpu.memory_space<vmem>>, vector<128x128xf32>
    tpu.vector_store %arg9[%c0_6, %c0_7], %8 {strides = array<i32>} : memref<128x128xf32, #tpu.memory_space<vmem>>, vector<128x128xf32>,
    %c0_i32_8 = arith.constant 0 : i32
    %10 = arith.cmpi eq, %arg1, %c0_i32_8 : i32
    %11 = arith.extui %10 : i1 to i32
    %c0_i32_9 = arith.constant 0 : i32
    %12 = arith.cmpi ne, %11, %c0_i32_9 : i32
    scf.if %12 {
      %c0_10 = arith.constant 0 : index
      %c0_11 = arith.constant 0 : index
      %13 = vector.load %arg4[%c0_10, %c0_11] : memref<128x128xf32, #tpu.memory_space<vmem>>, vector<128x128xf32>
      %c0_12 = arith.constant 0 : index
      %c0_13 = arith.constant 0 : index
      %14 = vector.load %arg5[%c0_12, %c0_13] : memref<128x128xf32, #tpu.memory_space<vmem>>, vector<128x128xf32>
      %cst_14 = arith.constant dense<0.000000e+00> : vector<128x128xf32>
      %15 = tpu.matmul %13, %14, %cst_14 {dimension_numbers = #tpu.dot_dimension_numbers<[1], [0], [0], [1], [0, 0, 1, 1], [], []>} : vector<128x128xf32>, vector<128x128xf32>, vector<128x128xf32> -> vector<128x128xf32>
      %c0_15 = arith.constant 0 : index
      %c0_16 = arith.constant 0 : index
      %16 = vector.load %arg9[%c0_15, %c0_16] : memref<128x128xf32, #tpu.memory_space<vmem>>, vector<128x128xf32>
      %17 = arith.truncf %16 : vector<128x128xf32> to vector<128x128xbf16>
      %c0_17 = arith.constant 0 : index
      %c0_18 = arith.constant 0 : index
      %18 = vector.load %arg6[%c0_17, %c0_18] : memref<128x128xbf16, #tpu.memory_space<vmem>>, vector<128x128xbf16>
      %cst_19 = arith.constant dense<0.000000e+00> : vector<128x128xf32>
      %19 = tpu.matmul %17, %18, %cst_19 {dimension_numbers = #tpu.dot_dimension_numbers<[1], [0], [0], [1], [0, 0, 1, 1], [], []>} : vector<128x128xbf16>, vector<128x128xbf16>, vector<128x128xf32> -> vector<128x128xf32>
      %20 = arith.addf %15, %19 : vector<128x128xf32>
      %c0_20 = arith.constant 0 : index
      %c0_21 = arith.constant 0 : index
      %21 = vector.load %arg7[%c0_20, %c0_21] : memref<1x128xf32, #tpu.memory_space<vmem>>, vector<1x128xf32>
      %22 = vector.broadcast %21 : vector<1x128xf32> to vector<128x128xf32>
      %23 = arith.addf %20, %22 : vector<128x128xf32>
      %cst_22 = arith.constant 0.000000e+00 : f32
      %24 = vector.broadcast %cst_22 : f32 to vector<128x128xf32>
      %25 = arith.maximumf %23, %24 : vector<128x128xf32>
      %c0_23 = arith.constant 0 : index
      %c0_24 = arith.constant 0 : index
      %26 = vector.load %arg8[%c0_23, %c0_24] : memref<128x128xf32, #tpu.memory_space<vmem>>, vector<128x128xf32>
      tpu.vector_store %arg8[%c0_23, %c0_24], %25 {strides = array<i32>} : memref<128x128xf32, #tpu.memory_space<vmem>>, vector<128x128xf32>,
    } else {
    }
    return
  }
  func.func @transform_0(%arg0: i32, %arg1: i32) -> (i32, i32) {
    %c0_i32 = arith.constant 0 : i32
    return %arg0, %arg1 : i32, i32
  }
  func.func @transform_1(%arg0: i32, %arg1: i32) -> (i32, i32) {
    %c0_i32 = arith.constant 0 : i32
    %c0_i32_0 = arith.constant 0 : i32
    return %arg1, %c0_i32 : i32, i32
  }
  func.func @transform_2(%arg0: i32, %arg1: i32) -> (i32, i32) {
    %c0_i32 = arith.constant 0 : i32
    %c0_i32_0 = arith.constant 0 : i32
    return %arg0, %c0_i32 : i32, i32
  }
  func.func @transform_3(%arg0: i32, %arg1: i32) -> (i32, i32) {
    %c0_i32 = arith.constant 0 : i32
    %c0_i32_0 = arith.constant 0 : i32
    %c0_i32_1 = arith.constant 0 : i32
    return %c0_i32, %c0_i32_0 : i32, i32
  }
  func.func @transform_4(%arg0: i32, %arg1: i32) -> (i32, i32) {
    %c0_i32 = arith.constant 0 : i32
    %c0_i32_0 = arith.constant 0 : i32
    %c0_i32_1 = arith.constant 0 : i32
    return %c0_i32, %c0_i32_0 : i32, i32
  }
  func.func @transform_5(%arg0: i32, %arg1: i32) -> (i32, i32) {
    %c0_i32 = arith.constant 0 : i32
    %c0_i32_0 = arith.constant 0 : i32
    %c0_i32_1 = arith.constant 0 : i32
    return %c0_i32, %c0_i32_0 : i32, i32
  }
  func.func @transform_6(%arg0: i32, %arg1: i32) -> (i32, i32) {
    %c0_i32 = arith.constant 0 : i32
    %c0_i32_0 = arith.constant 0 : i32
    return %arg0, %c0_i32 : i32, i32
  }
}

</mosaic_0001>

<bundles_post_ra>
// kernel: tpu_custom_call.1
= control target key start
LH: loop header
LB: loop body
LE: loop exit
PB: predicated region body
PF: predicated region fallthrough
CT: control target
= control target key end

     0   :  { %11 = vsyncpa [#allocation4], 0  ;;  %s1358_s0 = inlined_call_operand.hbm [shape: s8[128,128], index: 0, kind: input, shape index: {}]   ;;  %s1359_s1 = inlined_call_operand.hbm [shape: bf16[128,128], index: 1, kind: input, shape index: {}]   ;;  %s1360_s2 = inlined_call_operand.hbm [shape: f32[128,128], index: 2, kind: input, shape index: {}]   ;;  %s1361_s3 = inlined_call_operand.hbm [shape: f32[128,128], index: 3, kind: input, shape index: {}]   ;;  %s1362_s4 = inlined_call_operand.hbm [shape: bf16[128,128], index: 4, kind: input, shape index: {}]   ;;  %s1363_s5 = inlined_call_operand.vmem [shape: f32[1,128], index: 5, kind: input, shape index: {}]   ;;  %s1364_s6 = inlined_call_operand.hbm [shape: f32[128,128], index: 6, kind: output, shape index: {}]  }
   0x1   :  { %12 = vsyncpa [#allocation7], 0 }
   0x2   :  { %13 = vsyncpa [#allocation10], 0 }
   0x3   :  { %14 = vsyncpa [#allocation5], 0  ;;  %s1160_s21 = smov [#allocation6]  }
   0x4   :  { %s32_s22 = sshll.u32 %s1160_s21, 4  ;;  %s33_s22 = int_to_ptr.vmem [resolvable:$true] %s32_s22 }
   0x5   :  { %s1040_s23 = scalar_lea.vmem %s33_s22, 1024  ;;  %p1045_p1 = scmp.lt.s32.totalorder %s33_s22, %s33_s22 }
   0x6   :  { %p1041_p0 = scmp.ne.s32.totalorder %s33_s22, %s1040_s23  ;;  %p1046_p2 = scmp.lt.s32.totalorder %s1040_s23, %s1040_s23 }
   0x8   :  { %p1047_p3 = por %p1046_p2, %p1045_p1 }
   0xa   :  { %p1048_p4 = pnand %p1047_p3, %p1041_p0 }
   0xc   :  { %1051 = shalt.err (!%p1048_p4)
}
   0xd   :  { %s1161_s24 = smov 64   ;;  %s1162_s25 = smov 4  }
   0xe   :  { %38 = dma.hbm_to_vmem [thread:$0]  %s1359_s1, 1024, %s33_s22, [#allocation7], %s1161_s24, %s1161_s24, %s1162_s25  }
   0xf   :  { %s1163_s28 = smov [#allocation9]   ;;  %s1164_s30 = smov [#allocation3]  }
  0x10   :  { %s56_s29 = sshll.u32 %s1163_s28, 4  ;;  %s20_s7 = sshll.u32 %s1164_s30, 4  ;;  %s57_s29 = int_to_ptr.vmem [resolvable:$true] %s56_s29  ;;  %s21_s7 = int_to_ptr.vmem [resolvable:$true] %s20_s7 }
  0x11   :  { %s1060_s8 = scalar_lea.vmem %s57_s29, 2048  ;;  %p1065_p6 = scmp.lt.s32.totalorder %s57_s29, %s57_s29 }
  0x12   :  { %p1061_p5 = scmp.ne.s32.totalorder %s57_s29, %s1060_s8  ;;  %p1066_p7 = scmp.lt.s32.totalorder %s1060_s8, %s1060_s8 }
  0x14   :  { %p1067_p8 = por %p1066_p7, %p1065_p6 }
  0x16   :  { %p1068_p9 = pnand %p1067_p8, %p1061_p5 }
  0x18   :  { %1071 = shalt.err (!%p1068_p9)
}
  0x19   :  { %s1165_s9 = smov 128   ;;  %s1166_s10 = smov 8  }
  0x1a   :  { %62 = dma.hbm_to_vmem [thread:$0]  %s1361_s3, 2048, %s57_s29, [#allocation10], %s1165_s9, %s1165_s9, %s1166_s10  }
  0x1b   :  { %s1080_s1 = scalar_lea.vmem %s21_s7, 512  ;;  %p1085_p11 = scmp.lt.s32.totalorder %s21_s7, %s21_s7 }
  0x1c   :  { %p1081_p10 = scmp.ne.s32.totalorder %s21_s7, %s1080_s1  ;;  %p1086_p12 = scmp.lt.s32.totalorder %s1080_s1, %s1080_s1 }
  0x1e   :  { %p1087_p13 = por %p1086_p12, %p1085_p11 }
  0x20   :  { %p1088_p0 = pnand %p1087_p13, %p1081_p10 }
  0x22   :  { %1091 = shalt.err (!%p1088_p0)
}
  0x23   :  { %26 = dma.hbm_to_vmem [thread:$0]  %s1358_s0, 512, %s21_s7, [#allocation4], %s1165_s9, %s1165_s9, %s1166_s10  }
  0x24   :  { %s1167_s15 = smov [#allocation8]   ;;  %s1168_s17 = smov [#allocation11]  }
  0x25   :  { %s44_s16 = sshll.u32 %s1167_s15, 4  ;;  %s68_s3 = sshll.u32 %s1168_s17, 4  ;;  %s45_s16 = int_to_ptr.vmem [resolvable:$true] %s44_s16  ;;  %s69_s3 = int_to_ptr.vmem [resolvable:$true] %s68_s3 }
  0x26   :  { %s1100_s18 = scalar_lea.vmem %s45_s16, 2048  ;;  %p1105_p2 = scmp.lt.s32.totalorder %s45_s16, %s45_s16 }
  0x27   :  { %p1101_p1 = scmp.ne.s32.totalorder %s45_s16, %s1100_s18  ;;  %p1106_p3 = scmp.lt.s32.totalorder %s1100_s18, %s1100_s18 }
  0x29   :  { %p1107_p4 = por %p1106_p3, %p1105_p2 }
  0x2b   :  { %p1108_p5 = pnand %p1107_p4, %p1101_p1 }
  0x2d   :  { %1111 = shalt.err (!%p1108_p5)
}
  0x2e   :  { %50 = dma.hbm_to_vmem [thread:$0]  %s1360_s2, 2048, %s45_s16, [#allocation7], %s1165_s9, %s1165_s9, %s1166_s10  }
  0x2f   :  { %s1120_s0 = scalar_lea.vmem %s69_s3, 1024  ;;  %p1125_p7 = scmp.lt.s32.totalorder %s69_s3, %s69_s3 }
  0x30   :  { %p1121_p6 = scmp.ne.s32.totalorder %s69_s3, %s1120_s0  ;;  %p1126_p8 = scmp.lt.s32.totalorder %s1120_s0, %s1120_s0 }
  0x32   :  { %p1127_p9 = por %p1126_p8, %p1125_p7 }
  0x34   :  { %p1128_p10 = pnand %p1127_p9, %p1121_p6 }
  0x36   :  { %1131 = shalt.err (!%p1128_p10)
}
  0x37   :  { %74 = dma.hbm_to_vmem [thread:$0]  %s1362_s4, 1024, %s69_s3, [#allocation10], %s1161_s24, %s1161_s24, %s1162_s25  }
  0x38   :  { %1152 = dma.done.wait [#allocation4], 512  }
  0x39   :  { %1153 = vsyncadd [#allocation4], 4294966784 }
  0x3a   :  { %1154 = dma.done.wait [#allocation7], 3072  }
  0x3b   :  { %1155 = vsyncadd [#allocation7], 4294964224 }
  0x3c   :  { %1156 = dma.done.wait [#allocation10], 3072  }
  0x3d   :  { %1157 = vsyncadd [#allocation10], 4294964224  ;;  %v1016_v0 = vld [vmem:[#allocation6 + $0x38] sm:$0xff]   ;;  %v1017_v1 = vld [vmem:[#allocation6 + $0x30] sm:$0xff]  }
  0x3e   :  { %854 = vmatprep.subr.bf16.mxu0 %v1016_v0  ;;  %v1018_v2 = vld [vmem:[#allocation6 + $0x28] sm:$0xff]   ;;  %v1019_v3 = vld [vmem:[#allocation6 + $0x20] sm:$0xff]   ;;  %v1020_v6 = vld [vmem:[#allocation6 + $0x18] sm:$0xff]  }
  0x3f   :  { %855 = vmatpush3.bf16.msra.mxu0 %v1016_v0  ;;  %v129_v4 = vld [vmem:[#allocation3] sm:$0xff]  ;;  %v1024_v7 = vld [vmem:[#allocation11 + $0x38] sm:$0xff]   ;;  %v1025_v8 = vld [vmem:[#allocation11 + $0x30] sm:$0xff]  }
  0x40   :  { %856 = vmatprep.subr.bf16.mxu0 %v1017_v1  ;;  %v133_v5 = vunpack.c.l.s8.bf16 %v129_v4  ;;  %886 = vmatprep.subr.bf16.mxu1 %v1024_v7  ;;  %v1026_v9 = vld [vmem:[#allocation11 + $0x28] sm:$0xff]   ;;  %v1021_v10 = vld [vmem:[#allocation6 + $0x10] sm:$0xff]   ;;  %v1027_v12 = vld [vmem:[#allocation11 + $0x20] sm:$0xff]   ;;  %v134_v18 = vunpack.c.h.s8.bf16 %v129_v4 }
  0x41   :  { %887 = vmatpush3.bf16.msra.mxu1 %v1024_v7  ;;  %v1022_v11 = vld [vmem:[#allocation6 + $0x8] sm:$0xff]   ;;  %v1028_v13 = vld [vmem:[#allocation11 + $0x18] sm:$0xff]   ;;  %v1023_v14 = vld [vmem:[#allocation6] sm:$0xff]  }
  0x42   :  { %870 = vmatprep.mubr.bf16.mxu0 %v133_v5  ;;  %888 = vmatprep.subr.bf16.mxu1 %v1025_v8  ;;  %v1029_v15 = vld [vmem:[#allocation11 + $0x10] sm:$0xff]   ;;  %v130_v16 = vld [vmem:[#allocation3 + $0x8] sm:$0xff]  ;;  %v1235_v17 = vld [vmem:[#allocation9 + $0x78] sm:$0xff] }
  0x43   :  { %857 = vmatpush3.bf16.msra.mxu0 %v1017_v1  ;;  %v135_v19 = vunpack.c.l.s8.bf16 %v130_v16  ;;  %v1238_v20 = vld [vmem:[#allocation9 + $0x70] sm:$0xff]  ;;  %v1241_v21 = vld [vmem:[#allocation9 + $0x68] sm:$0xff]  ;;  %v1245_v23 = vld [vmem:[#allocation9 + $0x60] sm:$0xff]  ;;  %v136_v24 = vunpack.c.h.s8.bf16 %v130_v16 }
  0x44   :  { %858 = vmatprep.subr.bf16.mxu0 %v1018_v2  ;;  %v131_v22 = vld [vmem:[#allocation3 + $0x10] sm:$0xff]  ;;  %v1249_v26 = vld [vmem:[#allocation9 + $0x58] sm:$0xff]  ;;  %v1257_v28 = vld [vmem:[#allocation9 + $0x48] sm:$0xff] }
  0x45   :  { %889 = vmatpush3.bf16.msra.mxu1 %v1025_v8  ;;  %v137_v25 = vunpack.c.l.s8.bf16 %v131_v22  ;;  %v1253_v27 = vld [vmem:[#allocation9 + $0x50] sm:$0xff]  ;;  %v132_v29 = vld [vmem:[#allocation3 + $0x18] sm:$0xff]  ;;  %v1261_v30 = vld [vmem:[#allocation9 + $0x40] sm:$0xff]  ;;  %v138_v31 = vunpack.c.h.s8.bf16 %v131_v22 }
  0x46   :  { %890 = vmatprep.subr.bf16.mxu1 %v1026_v9  ;;  %v139_v32 = vunpack.c.l.s8.bf16 %v132_v29  ;;  %v1265_v33 = vld [vmem:[#allocation9 + $0x38] sm:$0xff]  ;;  %v1269_v34 = vld [vmem:[#allocation9 + $0x30] sm:$0xff]  ;;  %v1273_v35 = vld [vmem:[#allocation9 + $0x28] sm:$0xff]  ;;  %v140_v37 = vunpack.c.h.s8.bf16 %v132_v29 }
  0x47   :  { %859 = vmatpush3.bf16.msra.mxu0 %v1018_v2  ;;  %v1277_v36 = vld [vmem:[#allocation9 + $0x20] sm:$0xff]  ;;  %v1281_v38 = vld [vmem:[#allocation9 + $0x18] sm:$0xff]  ;;  %v1285_v39 = vld [vmem:[#allocation9 + $0x10] sm:$0xff] }
  0x48   :  { %860 = vmatprep.subr.bf16.mxu0 %v1019_v3  ;;  %v1291_v40 = vld [vmem:[#allocation9 + $0x8] sm:$0xff]  ;;  %v1295_v42 = vld [vmem:[#allocation9] sm:$0xff]  ;;  %v339_v46 = vld [vmem:[#allocation8 + $0x10] sm:$0xff] }
  0x49   :  { %891 = vmatpush3.bf16.msra.mxu1 %v1026_v9  ;;  %v1030_v41 = vld [vmem:[#allocation11 + $0x8] sm:$0xff]   ;;  %v337_v43 = vld [vmem:[#allocation8] sm:$0xff]  ;;  %v340_v47 = vld [vmem:[#allocation8 + $0x18] sm:$0xff] }
  0x4a   :  { %892 = vmatprep.subr.bf16.mxu1 %v1027_v12  ;;  %v338_v44 = vld [vmem:[#allocation8 + $0x8] sm:$0xff]  ;;  %v1031_v45 = vld [vmem:[#allocation11] sm:$0xff]   ;;  %v343_v50 = vld [vmem:[#allocation8 + $0x30] sm:$0xff] }
  0x4b   :  { %861 = vmatpush3.bf16.msra.mxu0 %v1019_v3  ;;  %v341_v48 = vld [vmem:[#allocation8 + $0x20] sm:$0xff]  ;;  %v342_v49 = vld [vmem:[#allocation8 + $0x28] sm:$0xff]  ;;  %v344_v51 = vld [vmem:[#allocation8 + $0x38] sm:$0xff] }
  0x4c   :  { %862 = vmatprep.subr.bf16.mxu0 %v1020_v6  ;;  %v349_v16 = vld [vmem:[#allocation8 + $0x60] sm:$0xff] }
  0x4d   :  { %893 = vmatpush3.bf16.msra.mxu1 %v1027_v12  ;;  %v345_v12 = vld [vmem:[#allocation8 + $0x40] sm:$0xff] }
  0x4e   :  { %894 = vmatprep.subr.bf16.mxu1 %v1028_v13 }
  0x4f   :  { %863 = vmatpush3.bf16.msra.mxu0 %v1020_v6 }
  0x50   :  { %864 = vmatprep.subr.bf16.mxu0 %v1021_v10 }
  0x51   :  { %895 = vmatpush3.bf16.msra.mxu1 %v1028_v13  ;;  %v346_v13 = vld [vmem:[#allocation8 + $0x48] sm:$0xff] }
  0x52   :  { %896 = vmatprep.subr.bf16.mxu1 %v1029_v15 }
  0x53   :  { %865 = vmatpush3.bf16.msra.mxu0 %v1021_v10 }
  0x54   :  { %866 = vmatprep.subr.bf16.mxu0 %v1022_v11 }
  0x55   :  { %897 = vmatpush3.bf16.msra.mxu1 %v1029_v15  ;;  %v348_v15 = vld [vmem:[#allocation8 + $0x58] sm:$0xff] }
  0x56   :  { %898 = vmatprep.subr.bf16.mxu1 %v1030_v41 }
  0x57   :  { %867 = vmatpush3.bf16.msra.mxu0 %v1022_v11 }
  0x58   :  { %868 = vmatprep.subr.bf16.mxu0 %v1023_v14 }
  0x59   :  { %899 = vmatpush3.bf16.msra.mxu1 %v1030_v41 }
  0x5a   :  { %900 = vmatprep.subr.bf16.mxu1 %v1031_v45 }
  0x5b   :  { %869 = vmatpush3.bf16.msra.mxu0 %v1023_v14  ;;  %v347_v14 = vld [vmem:[#allocation8 + $0x50] sm:$0xff] }
  0x5c   :  { %918 = vmatprep.subr.mxu0 %v1235_v17 }
  0x5d   :  { %901 = vmatpush3.bf16.msra.mxu1 %v1031_v45 }
  0x5e   :  { %871 = vmatmul.mubr.bf16.vlgmr.msra.gmra.mxu0 %v134_v18  ;;  %974 = vmatprep.subr.mxu1 %v1235_v17  ;;  %v351_v18 = vld [vmem:[#allocation8 + $0x70] sm:$0xff] }
  0x5f   :  { %874 = vmatprep.mubr.bf16.mxu0 %v135_v19  ;;  %919 = vmatpush3.msra.mxu0 %v1235_v17  ;;  %v352_v19 = vld [vmem:[#allocation8 + $0x78] sm:$0xff] }
  0x60   :  { %920 = vmatprep.subr.mxu0 %v1238_v20 }
  0x61   :  { %921 = vmatpush3.msra.mxu0 %v1238_v20 }
  0x62   :  { %922 = vmatprep.subr.mxu0 %v1241_v21 }
  0x63   :  { %923 = vmatpush3.msra.mxu0 %v1241_v21 }
  0x64   :  { %924 = vmatprep.subr.mxu0 %v1245_v23 }
  0x65   :  { %925 = vmatpush3.msra.mxu0 %v1245_v23 }
  0x66   :  { %875 = vmatmul.mubr.bf16.gmra.mxu0 %v136_v24  ;;  %926 = vmatprep.subr.mxu0 %v1249_v26 }
  0x67   :  { %878 = vmatprep.mubr.bf16.mxu0 %v137_v25  ;;  %927 = vmatpush3.msra.mxu0 %v1249_v26 }
  0x68   :  { %928 = vmatprep.subr.mxu0 %v1253_v27 }
  0x69   :  { %929 = vmatpush3.msra.mxu0 %v1253_v27 }
  0x6a   :  { %930 = vmatprep.subr.mxu0 %v1257_v28 }
  0x6b   :  { %931 = vmatpush3.msra.mxu0 %v1257_v28 }
  0x6c   :  { %932 = vmatprep.subr.mxu0 %v1261_v30 }
  0x6d   :  { %933 = vmatpush3.msra.mxu0 %v1261_v30 }
  0x6e   :  { %879 = vmatmul.mubr.bf16.gmra.mxu0 %v138_v31  ;;  %934 = vmatprep.subr.mxu0 %v1265_v33 }
  0x6f   :  { %882 = vmatprep.mubr.bf16.mxu0 %v139_v32  ;;  %935 = vmatpush3.msra.mxu0 %v1265_v33 }
  0x70   :  { %936 = vmatprep.subr.mxu0 %v1269_v34 }
  0x71   :  { %937 = vmatpush3.msra.mxu0 %v1269_v34 }
  0x72   :  { %938 = vmatprep.subr.mxu0 %v1273_v35 }
  0x73   :  { %939 = vmatpush3.msra.mxu0 %v1273_v35 }
  0x74   :  { %940 = vmatprep.subr.mxu0 %v1277_v36 }
  0x75   :  { %941 = vmatpush3.msra.mxu0 %v1277_v36 }
  0x76   :  { %883 = vmatmul.mubr.bf16.gmra.mxu0 %v140_v37  ;;  %942 = vmatprep.subr.mxu0 %v1281_v38 }
  0x77   :  { %943 = vmatpush3.msra.mxu0 %v1281_v38  ;;  %950 = vmatprep.mubr.f32.mxu0 %v337_v43 }
  0x78   :  { %944 = vmatprep.subr.mxu0 %v1285_v39 }
  0x79   :  { %945 = vmatpush3.msra.mxu0 %v1285_v39 }
  0x7a   :  { %946 = vmatprep.subr.mxu0 %v1291_v40 }
  0x7b   :  { %947 = vmatpush3.msra.mxu0 %v1291_v40 }
  0x7c   :  { %948 = vmatprep.subr.mxu0 %v1295_v42 }
  0x7d   :  { %949 = vmatpush3.msra.mxu0 %v1295_v42 }
  0x7e   :  { %951 = vmatmul.mubr.f32.vlgmr.msra.gmra.mxu0 %v338_v44 }
  0x7f   :  { %953 = vmatprep.mubr.f32.mxu0 %v339_v46 }
  0x82   :  { %954 = vmatmul.mubr.f32.gmra.mxu0 %v340_v47 }
  0x83   :  { %956 = vmatprep.mubr.f32.mxu0 %v341_v48 }
  0x86   :  { %957 = vmatmul.mubr.f32.gmra.mxu0 %v342_v49 }
  0x87   :  { %959 = vmatprep.mubr.f32.mxu0 %v343_v50 }
  0x8a   :  { %960 = vmatmul.mubr.f32.gmra.mxu0 %v344_v51 }
 0x11e   :  { %v872_v52 = vpop.f32.mrf.mxu0 }
 0x120   :  { %v239_v53 = vpop.f32.mrf.mxu0 }
 0x122   :  { %v873_v54 = vpop.f32.mrf.mxu0 }
 0x123   :  { %v386_v57 = vpack.c.bf16 %v873_v54, %v872_v52 }
 0x124   :  { %v242_v55 = vpop.f32.mrf.mxu0 }
 0x125   :  { %v385_v56 = vpack.c.bf16 %v242_v55, %v239_v53 }
 0x126   :  { %v876_v58 = vpop.f32.mrf.mxu0 }
 0x127   :  { %902 = vmatprep.mubr.bf16.mxu1 %v385_v56 }
 0x128   :  { %v255_v59 = vpop.f32.mrf.mxu0  ;;  %903 = vmatmul.mubr.bf16.vlgmr.msra.gmra.mxu1 %v386_v57 }
 0x129   :  { %990 = vmatpush3.msra.mxu1 %v1235_v17  ;;  %v350_v17 = vld [vmem:[#allocation8 + $0x68] sm:$0xff] }
 0x12a   :  { %975 = vmatprep.subr.mxu1 %v1238_v20  ;;  %v877_v60 = vpop.f32.mrf.mxu0 }
 0x12b   :  { %991 = vmatpush3.msra.mxu1 %v1238_v20  ;;  %v388_v63 = vpack.c.bf16 %v877_v60, %v876_v58 }
 0x12c   :  { %976 = vmatprep.subr.mxu1 %v1241_v21  ;;  %v258_v61 = vpop.f32.mrf.mxu0 }
 0x12d   :  { %v387_v62 = vpack.c.bf16 %v258_v61, %v255_v59  ;;  %992 = vmatpush3.msra.mxu1 %v1241_v21 }
 0x12e   :  { %977 = vmatprep.subr.mxu1 %v1245_v23  ;;  %v880_v0 = vpop.f32.mrf.mxu0 }
 0x12f   :  { %993 = vmatpush3.msra.mxu1 %v1245_v23  ;;  %906 = vmatprep.mubr.bf16.mxu1 %v387_v62 }
 0x130   :  { %978 = vmatprep.subr.mxu1 %v1249_v26  ;;  %v271_v1 = vpop.f32.mrf.mxu0  ;;  %907 = vmatmul.mubr.bf16.gmra.mxu1 %v388_v63 }
 0x131   :  { %994 = vmatpush3.msra.mxu1 %v1249_v26 }
 0x132   :  { %979 = vmatprep.subr.mxu1 %v1253_v27  ;;  %v881_v2 = vpop.f32.mrf.mxu0 }
 0x133   :  { %995 = vmatpush3.msra.mxu1 %v1253_v27  ;;  %v390_v5 = vpack.c.bf16 %v881_v2, %v880_v0  ;;  %v1334_v27 = vld [vmem:[%s1363_s5] ss:$0 sm:$0xff]  ;;  %s1169_s5 = smov [#allocation12]  }
 0x134   :  { %980 = vmatprep.subr.mxu1 %v1257_v28  ;;  %v274_v3 = vpop.f32.mrf.mxu0  ;;  %s759_s23 = sshll.u32 %s1169_s5, 4  ;;  %s760_s23 = int_to_ptr.vmem [resolvable:$true] %s759_s23 }
 0x135   :  { %v389_v4 = vpack.c.bf16 %v274_v3, %v271_v1  ;;  %996 = vmatpush3.msra.mxu1 %v1257_v28  ;;  %s1132_s24 = scalar_lea.vmem %s760_s23, 2048  ;;  %p1137_p12 = scmp.lt.s32.totalorder %s760_s23, %s760_s23 }
 0x136   :  { %981 = vmatprep.subr.mxu1 %v1261_v30  ;;  %v884_v6 = vpop.f32.mrf.mxu0  ;;  %p1133_p11 = scmp.ne.s32.totalorder %s760_s23, %s1132_s24  ;;  %p1138_p13 = scmp.lt.s32.totalorder %s1132_s24, %s1132_s24 }
 0x137   :  { %997 = vmatpush3.msra.mxu1 %v1261_v30  ;;  %910 = vmatprep.mubr.bf16.mxu1 %v389_v4 }
 0x138   :  { %982 = vmatprep.subr.mxu1 %v1265_v33  ;;  %v287_v7 = vpop.f32.mrf.mxu0  ;;  %911 = vmatmul.mubr.bf16.gmra.mxu1 %v390_v5  ;;  %p1139_p0 = por %p1138_p13, %p1137_p12 }
 0x139   :  { %998 = vmatpush3.msra.mxu1 %v1265_v33 }
 0x13a   :  { %983 = vmatprep.subr.mxu1 %v1269_v34  ;;  %v885_v8 = vpop.f32.mrf.mxu0  ;;  %p1140_p1 = pnand %p1139_p0, %p1133_p11 }
 0x13b   :  { %999 = vmatpush3.msra.mxu1 %v1269_v34  ;;  %v392_v11 = vpack.c.bf16 %v885_v8, %v884_v6 }
 0x13c   :  { %984 = vmatprep.subr.mxu1 %v1273_v35  ;;  %v290_v9 = vpop.f32.mrf.mxu0 }
 0x13d   :  { %v391_v10 = vpack.c.bf16 %v290_v9, %v287_v7  ;;  %1000 = vmatpush3.msra.mxu1 %v1273_v35 }
 0x13e   :  { %985 = vmatprep.subr.mxu1 %v1277_v36  ;;  %v952_v20 = vpop.f32.mrf.mxu0 }
 0x13f   :  { %1001 = vmatpush3.msra.mxu1 %v1277_v36  ;;  %914 = vmatprep.mubr.bf16.mxu1 %v391_v10 }
 0x140   :  { %986 = vmatprep.subr.mxu1 %v1281_v38  ;;  %915 = vmatmul.mubr.bf16.gmra.mxu1 %v392_v11  ;;  %v620_v21 = vpop.f32.mrf.mxu0 }
 0x141   :  { %1002 = vmatpush3.msra.mxu1 %v1281_v38  ;;  %962 = vmatprep.mubr.f32.mxu1 %v345_v12 }
 0x142   :  { %987 = vmatprep.subr.mxu1 %v1285_v39  ;;  %v955_v22 = vpop.f32.mrf.mxu0 }
 0x143   :  { %1003 = vmatpush3.msra.mxu1 %v1285_v39 }
 0x144   :  { %988 = vmatprep.subr.mxu1 %v1291_v40  ;;  %v630_v23 = vpop.f32.mrf.mxu0 }
 0x145   :  { %1004 = vmatpush3.msra.mxu1 %v1291_v40 }
 0x146   :  { %989 = vmatprep.subr.mxu1 %v1295_v42  ;;  %v958_v24 = vpop.f32.mrf.mxu0 }
 0x147   :  { %1005 = vmatpush3.msra.mxu1 %v1295_v42 }
 0x148   :  { %963 = vmatmul.mubr.f32.vlgmr.msra.gmra.mxu1 %v346_v13  ;;  %v640_v25 = vpop.f32.mrf.mxu0 }
 0x149   :  { %965 = vmatprep.mubr.f32.mxu1 %v347_v14 }
 0x14a   :  { %v961_v30 = vpop.f32.mrf.mxu0 }
 0x14c   :  { %966 = vmatmul.mubr.f32.gmra.mxu1 %v348_v15  ;;  %v650_v38 = vpop.f32.mrf.mxu0 }
 0x14d   :  { %968 = vmatprep.mubr.f32.mxu1 %v349_v16 }
 0x150   :  { %969 = vmatmul.mubr.f32.gmra.mxu1 %v350_v17 }
 0x151   :  { %971 = vmatprep.mubr.f32.mxu1 %v351_v18 }
 0x154   :  { %972 = vmatmul.mubr.f32.gmra.mxu1 %v352_v19 }
 0x1e8   :  { %v904_v26 = vpop.f32.mrf.mxu1 }
 0x1e9   :  { %v631_v28 = vadd.f32 %v904_v26, %v630_v23 }
 0x1ea   :  { %v491_v29 = vpop.f32.mrf.mxu1 }
 0x1eb   :  { %v708_v31 = vadd.f32 %v1334_v27, %v631_v28  ;;  %v621_v32 = vadd.f32 %v620_v21, %v491_v29 }
 0x1ec   :  { %v905_v33 = vpop.f32.mrf.mxu1 }
 0x1ed   :  { %v724_v34 = vmax.f32 %v708_v31, 0.0  ;;  %v706_v35 = vadd.f32 %v1334_v27, %v621_v32  ;;  %v636_v36 = vadd.f32 %v955_v22, %v905_v33 }
 0x1ee   :  { %v494_v37 = vpop.f32.mrf.mxu1 }
 0x1ef   :  { %740 = vst [vmem:[#allocation12 + $0x10] sm:$0xff] %v724_v34  ;;  %v722_v39 = vmax.f32 %v706_v35, 0.0  ;;  %v709_v40 = vadd.f32 %v1334_v27, %v636_v36  ;;  %v626_v41 = vadd.f32 %v952_v20, %v494_v37 }
 0x1f0   :  { %v908_v42 = vpop.f32.mrf.mxu1 }
 0x1f1   :  { %738 = vst [vmem:[#allocation12] sm:$0xff] %v722_v39  ;;  %v725_v43 = vmax.f32 %v709_v40, 0.0  ;;  %v707_v44 = vadd.f32 %v1334_v27, %v626_v41  ;;  %v651_v45 = vadd.f32 %v908_v42, %v650_v38 }
 0x1f2   :  { %v507_v46 = vpop.f32.mrf.mxu1 }
 0x1f3   :  { %741 = vst [vmem:[#allocation12 + $0x18] sm:$0xff] %v725_v43  ;;  %v723_v47 = vmax.f32 %v707_v44, 0.0  ;;  %v712_v48 = vadd.f32 %v1334_v27, %v651_v45  ;;  %v641_v49 = vadd.f32 %v640_v25, %v507_v46 }
 0x1f4   :  { %v909_v50 = vpop.f32.mrf.mxu1 }
 0x1f5   :  { %739 = vst [vmem:[#allocation12 + $0x8] sm:$0xff] %v723_v47  ;;  %v728_v51 = vmax.f32 %v712_v48, 0.0  ;;  %v710_v52 = vadd.f32 %v1334_v27, %v641_v49  ;;  %v656_v53 = vadd.f32 %v961_v30, %v909_v50 }
 0x1f6   :  { %v510_v54 = vpop.f32.mrf.mxu1 }
 0x1f7   :  { %744 = vst [vmem:[#allocation12 + $0x30] sm:$0xff] %v728_v51  ;;  %v726_v55 = vmax.f32 %v710_v52, 0.0  ;;  %v713_v56 = vadd.f32 %v1334_v27, %v656_v53  ;;  %v646_v57 = vadd.f32 %v958_v24, %v510_v54 }
 0x1f8   :  { %v912_v58 = vpop.f32.mrf.mxu1 }
 0x1f9   :  { %742 = vst [vmem:[#allocation12 + $0x20] sm:$0xff] %v726_v55  ;;  %v729_v59 = vmax.f32 %v713_v56, 0.0  ;;  %v711_v60 = vadd.f32 %v1334_v27, %v646_v57 }
 0x1fa   :  { %v523_v61 = vpop.f32.mrf.mxu1 }
 0x1fb   :  { %745 = vst [vmem:[#allocation12 + $0x38] sm:$0xff] %v729_v59  ;;  %v727_v62 = vmax.f32 %v711_v60, 0.0 }
 0x1fc   :  { %v913_v63 = vpop.f32.mrf.mxu1 }
 0x1fd   :  { %743 = vst [vmem:[#allocation12 + $0x28] sm:$0xff] %v727_v62 }
 0x1fe   :  { %v526_v0 = vpop.f32.mrf.mxu1 }
 0x200   :  { %v916_v1 = vpop.f32.mrf.mxu1 }
 0x202   :  { %v539_v2 = vpop.f32.mrf.mxu1 }
 0x204   :  { %v917_v3 = vpop.f32.mrf.mxu1 }
 0x206   :  { %v542_v4 = vpop.f32.mrf.mxu1 }
 0x208   :  { %v964_v5 = vpop.f32.mrf.mxu1 }
 0x209   :  { %v666_v6 = vadd.f32 %v964_v5, %v526_v0 }
 0x20a   :  { %v660_v7 = vpop.f32.mrf.mxu1 }
 0x20b   :  { %v715_v8 = vadd.f32 %v1334_v27, %v666_v6  ;;  %v661_v9 = vadd.f32 %v660_v7, %v523_v61 }
 0x20c   :  { %v967_v10 = vpop.f32.mrf.mxu1 }
 0x20d   :  { %v731_v11 = vmax.f32 %v715_v8, 0.0  ;;  %v714_v12 = vadd.f32 %v1334_v27, %v661_v9  ;;  %v676_v13 = vadd.f32 %v967_v10, %v913_v63 }
 0x20e   :  { %v670_v14 = vpop.f32.mrf.mxu1 }
 0x20f   :  { %747 = vst [vmem:[#allocation12 + $0x48] sm:$0xff] %v731_v11  ;;  %v730_v15 = vmax.f32 %v714_v12, 0.0  ;;  %v717_v16 = vadd.f32 %v1334_v27, %v676_v13  ;;  %v671_v17 = vadd.f32 %v912_v58, %v670_v14 }
 0x210   :  { %v970_v18 = vpop.f32.mrf.mxu1 }
 0x211   :  { %746 = vst [vmem:[#allocation12 + $0x40] sm:$0xff] %v730_v15  ;;  %v733_v19 = vmax.f32 %v717_v16, 0.0  ;;  %v716_v20 = vadd.f32 %v1334_v27, %v671_v17  ;;  %v686_v21 = vadd.f32 %v970_v18, %v542_v4 }
 0x212   :  { %v680_v22 = vpop.f32.mrf.mxu1 }
 0x213   :  { %749 = vst [vmem:[#allocation12 + $0x58] sm:$0xff] %v733_v19  ;;  %v732_v23 = vmax.f32 %v716_v20, 0.0  ;;  %v719_v24 = vadd.f32 %v1334_v27, %v686_v21  ;;  %v681_v25 = vadd.f32 %v680_v22, %v539_v2 }
 0x214   :  { %v973_v26 = vpop.f32.mrf.mxu1 }
 0x215   :  { %748 = vst [vmem:[#allocation12 + $0x50] sm:$0xff] %v732_v23  ;;  %v735_v28 = vmax.f32 %v719_v24, 0.0  ;;  %v718_v29 = vadd.f32 %v1334_v27, %v681_v25  ;;  %v696_v30 = vadd.f32 %v973_v26, %v917_v3 }
 0x216   :  { %v690_v31 = vpop.f32.mrf.mxu1 }
 0x217   :  { %751 = vst [vmem:[#allocation12 + $0x68] sm:$0xff] %v735_v28  ;;  %v734_v32 = vmax.f32 %v718_v29, 0.0  ;;  %v721_v33 = vadd.f32 %v1334_v27, %v696_v30  ;;  %v691_v34 = vadd.f32 %v916_v1, %v690_v31 }
 0x219   :  { %750 = vst [vmem:[#allocation12 + $0x60] sm:$0xff] %v734_v32  ;;  %v737_v35 = vmax.f32 %v721_v33, 0.0  ;;  %v720_v36 = vadd.f32 %v1334_v27, %v691_v34 }
 0x21b   :  { %753 = vst [vmem:[#allocation12 + $0x78] sm:$0xff] %v737_v35  ;;  %v736_v37 = vmax.f32 %v720_v36, 0.0 }
 0x21d   :  { %752 = vst [vmem:[#allocation12 + $0x70] sm:$0xff] %v736_v37 }
 0x21e   :  { %1143 = shalt.err (!%p1140_p1)
}
 0x21f   :  { %765 = dma.vmem_to_hbm [thread:$0]  %s760_s23, 2048, %s1364_s6, [#allocation5], %s1165_s9, %s1165_s9, %s1166_s10  }
 0x220   :  { %1158 = dma.done.wait [#allocation5], 2048  }
 0x221   :  { %1159 = vsyncadd [#allocation5], 4294965248 }
 0x222   :  { %769 = vsyncpa [#allocation4], 1 }
 0x223   :  { %770 = vsyncpa [#allocation7], 1 }
 0x224   :  { %771 = vsyncpa [#allocation10], 1 }
 0x225   :  { %772 = vsyncpa [#allocation5], 1 }

</bundles_post_ra>
